<compile_context>
chip_gen: v6e
topology: v6e:2x2x1
jax: 0.10.0
libtpu: 0.0.40
codegen_flags: <defaults>
</compile_context>

<pallas_src>
import functools

import jax
import jax.numpy as jnp
import numpy as np
from jax.experimental import pallas as pl
from jax.experimental.pallas import tpu as pltpu

_SUBLANE = 8


def _round_up(x, m):
    return ((x + m - 1) // m) * m


def _default_softplus_dtype():
    """bf16 softplus on chips with a bf16 EUP path (v6e / v7x); f32 elsewhere."""
    try:
        kind = jax.devices()[0].device_kind.lower()
    except Exception:
        return jnp.float32
    return jnp.bfloat16 if ("v6" in kind or "v7" in kind) else jnp.float32


def _decoder_kernel(z_ref, w1_ref, b1_ref, w2_ref, b2_ref, out_ref, *,
                    compute_dtype, softplus_dtype):
    # fc1 on the MXU: bf16 operands (cast in-kernel), f32 accumulation.
    x = jnp.dot(z_ref[...].astype(compute_dtype),
                w1_ref[...].astype(compute_dtype),
                preferred_element_type=jnp.float32)
    x = x + b1_ref[...]                      # bias add kept in f32
    # Numerically-stable softplus (matches torch.nn.Softplus):
    #   softplus(x) = max(x, 0) + log1p(exp(-|x|))
    # Run on the EUP in bf16 on v6e/v7x, f32 on older chips.
    x = x.astype(softplus_dtype)
    h = jnp.maximum(x, 0) + jnp.log1p(jnp.exp(-jnp.abs(x)))
    # fc21 on the MXU.
    o = jnp.dot(h.astype(compute_dtype),
                w2_ref[...].astype(compute_dtype),
                preferred_element_type=jnp.float32)
    o = o + b2_ref[...]
    out_ref[...] = o.astype(out_ref.dtype)


def decoder_forward(z, w1_t, b1, w2_t, b2, *, tile_b=None,
                    compute_dtype=jnp.bfloat16, softplus_dtype=None,
                    out_dtype=None):
    """z: (B, z_dim); w1_t: (z_dim, hidden); b1: (hidden,) or (1, hidden);
    w2_t: (hidden, out); b2: (out,) or (1, out). Returns (B, out)."""
    B, Z = z.shape
    H = w1_t.shape[1]
    O = w2_t.shape[1]
    out_dtype = out_dtype if out_dtype is not None else z.dtype
    if softplus_dtype is None:
        softplus_dtype = _default_softplus_dtype()

    b1 = b1.reshape(1, H).astype(jnp.float32)
    b2 = b2.reshape(1, O).astype(jnp.float32)

    # --- batch tiling: big tiles to amortize per-step overhead; NO padding
    # (cdiv grid; Pallas masks the partial last block's reads/writes). ---
    if tile_b is None:
        tile_b = 4096
    tile_b = max(_SUBLANE, min(int(tile_b), _round_up(B, _SUBLANE)))
    tile_b = (tile_b // _SUBLANE) * _SUBLANE
    # v7x megacore: ensure the "parallel" batch axis has >= 2 grid steps so
    # both TensorCores get work (no effect on single-TC v5e/v6e).
    while pl.cdiv(B, tile_b) < 2 and tile_b > _SUBLANE:
        tile_b = max(_SUBLANE, ((tile_b // 2) // _SUBLANE) * _SUBLANE)
    grid = (pl.cdiv(B, tile_b),)

    z_itemsize = np.dtype(z.dtype).itemsize
    w_itemsize = np.dtype(w1_t.dtype).itemsize
    out_itemsize = np.dtype(out_dtype).itemsize
    cost = pl.CostEstimate(
        flops=2 * B * (Z * H + H * O),
        transcendentals=2 * B * H,  # exp + log1p per hidden element
        bytes_accessed=(B * Z * z_itemsize
                        + Z * H * w_itemsize + H * 4
                        + H * O * w_itemsize + O * 4
                        + B * O * out_itemsize),
    )

    kernel = functools.partial(_decoder_kernel,
                               compute_dtype=compute_dtype,
                               softplus_dtype=softplus_dtype)

    return pl.pallas_call(
        kernel,
        out_shape=jax.ShapeDtypeStruct((B, O), out_dtype),
        grid=grid,
        in_specs=[
            pl.BlockSpec((tile_b, Z), lambda i: (i, 0)),   # z: tiled over batch
            pl.BlockSpec((Z, H), lambda i: (0, 0)),        # W1: resident
            pl.BlockSpec((1, H), lambda i: (0, 0)),        # b1: resident
            pl.BlockSpec((H, O), lambda i: (0, 0)),        # W2: resident
            pl.BlockSpec((1, O), lambda i: (0, 0)),        # b2: resident
        ],
        out_specs=pl.BlockSpec((tile_b, O), lambda i: (i, 0)),
        compiler_params=pltpu.CompilerParams(
            dimension_semantics=("parallel",),
            vmem_limit_bytes=32 * 1024 * 1024,
        ),
        cost_estimate=cost,
    )(z, w1_t, b1, w2_t, b2)


def init_decoder_params(key, z_dim, hidden_dim, output_dim, dtype=jnp.float32):
    """Deterministic init mimicking nn.Linear's U(-1/sqrt(fan_in), +1/sqrt(fan_in))."""
    k1, k2, k3, k4 = jax.random.split(key, 4)
    bound1 = 1.0 / jnp.sqrt(z_dim)
    bound2 = 1.0 / jnp.sqrt(hidden_dim)
    # stored pre-transposed: (in, out)
    w1_t = jax.random.uniform(k1, (z_dim, hidden_dim), dtype, -bound1, bound1)
    b1 = jax.random.uniform(k2, (1, hidden_dim), dtype, -bound1, bound1)
    w2_t = jax.random.uniform(k3, (hidden_dim, output_dim), dtype, -bound2, bound2)
    b2 = jax.random.uniform(k4, (1, output_dim), dtype, -bound2, bound2)
    return w1_t, b1, w2_t, b2


if __name__ == "__main__":
    key = jax.random.PRNGKey(0)
    k_z, k_p, k_z2 = jax.random.split(key, 3)

    B, Z_DIM, HIDDEN_DIM, OUTPUT_DIM = 8, 32, 64, 16
    z = jax.random.normal(k_z, (B, Z_DIM), jnp.float32)
    w1_t, b1, w2_t, b2 = init_decoder_params(k_p, Z_DIM, HIDDEN_DIM, OUTPUT_DIM)

    out = jax.block_until_ready(decoder_forward(z, w1_t, b1, w2_t, b2))
    assert out.shape == (B, OUTPUT_DIM)

    sp_dtype = _default_softplus_dtype()

    # Tight-ish reference: same bf16 MXU operands / f32 accumulation and same
    # softplus dtype as the kernel.
    def ref_decoder(zz):
        x = jnp.dot(zz.astype(jnp.bfloat16), w1_t.astype(jnp.bfloat16),
                    preferred_element_type=jnp.float32) + b1.reshape(1, -1)
        x = x.astype(sp_dtype)
        h = jnp.maximum(x, 0) + jnp.log1p(jnp.exp(-jnp.abs(x)))
        return jnp.dot(h.astype(jnp.bfloat16), w2_t.astype(jnp.bfloat16),
                       preferred_element_type=jnp.float32) + b2.reshape(1, -1)

    ref = ref_decoder(z)
    assert jnp.allclose(out, ref, atol=1e-2, rtol=1e-2), \
        float(jnp.max(jnp.abs(out - ref)))

    # Loose check against the full-f32 torch semantics (bf16 rounding only).
    x1 = z @ w1_t + b1.reshape(1, -1)
    h_f32 = jnp.maximum(x1, 0.0) + jnp.log1p(jnp.exp(-jnp.abs(x1)))
    ref_f32 = h_f32 @ w2_t + b2.reshape(1, -1)
    assert jnp.allclose(out, ref_f32, atol=6e-2, rtol=6e-2), \
        float(jnp.max(jnp.abs(out - ref_f32)))

    # Multi-step grid with a partial last tile (B not a multiple of tile_b).
    B2 = 300
    z2 = jax.random.normal(k_z2, (B2, Z_DIM), jnp.float32)
    out2 = jax.block_until_ready(
        decoder_forward(z2, w1_t, b1, w2_t, b2, tile_b=128))
    assert out2.shape == (B2, OUTPUT_DIM)
    assert jnp.allclose(out2, ref_decoder(z2), atol=1e-2, rtol=1e-2)

    # Auto tile path (exercises the >=2-grid-step halving for v7x megacore).
    out3 = jax.block_until_ready(decoder_forward(z2, w1_t, b1, w2_t, b2))
    assert out3.shape == (B2, OUTPUT_DIM)
    assert jnp.allclose(out3, ref_decoder(z2), atol=1e-2, rtol=1e-2)

    print("KERNEL_OK")
</pallas_src>

<mosaic_0001>
module attributes {stable_mosaic.version = 11 : i64} {
  func.func @_decoder_kernel(%arg0: i32, %arg1: memref<8x32xf32, #tpu.memory_space<vmem>>, %arg2: memref<32x64xf32, #tpu.memory_space<vmem>>, %arg3: memref<1x64xf32, #tpu.memory_space<vmem>>, %arg4: memref<64x16xf32, #tpu.memory_space<vmem>>, %arg5: memref<1x16xf32, #tpu.memory_space<vmem>>, %arg6: memref<8x16xf32, #tpu.memory_space<vmem>>) attributes {dimension_semantics = [#tpu.dimension_semantics<parallel>], iteration_bounds = array<i64: 1>, scalar_prefetch = 0 : i64, scratch_operands = 0 : i64, tpu.core_type = #tpu.core_type<tc>, window_params = [{transform_indices = @transform_0, window_bounds = array<i64: 8, 32>}, {pipeline_mode = #tpu.pipeline_mode<synchronous>, transform_indices = @transform_1, window_bounds = array<i64: 32, 64>}, {pipeline_mode = #tpu.pipeline_mode<synchronous>, transform_indices = @transform_2, window_bounds = array<i64: 1, 64>}, {pipeline_mode = #tpu.pipeline_mode<synchronous>, transform_indices = @transform_3, window_bounds = array<i64: 64, 16>}, {pipeline_mode = #tpu.pipeline_mode<synchronous>, transform_indices = @transform_4, window_bounds = array<i64: 1, 16>}, {transform_indices = @transform_5, window_bounds = array<i64: 8, 16>}]} {
    %c0 = arith.constant 0 : index
    %c0_0 = arith.constant 0 : index
    %0 = vector.load %arg1[%c0, %c0_0] : memref<8x32xf32, #tpu.memory_space<vmem>>, vector<8x32xf32>
    %1 = arith.truncf %0 : vector<8x32xf32> to vector<8x32xbf16>
    %c0_1 = arith.constant 0 : index
    %c0_2 = arith.constant 0 : index
    %2 = vector.load %arg2[%c0_1, %c0_2] : memref<32x64xf32, #tpu.memory_space<vmem>>, vector<32x64xf32>
    %3 = arith.truncf %2 : vector<32x64xf32> to vector<32x64xbf16>
    %cst = arith.constant dense<0.000000e+00> : vector<8x64xf32>
    %4 = tpu.matmul %1, %3, %cst {dimension_numbers = #tpu.dot_dimension_numbers<[1], [0], [0], [1], [0, 0, 1, 1], [], []>} : vector<8x32xbf16>, vector<32x64xbf16>, vector<8x64xf32> -> vector<8x64xf32>
    %c0_3 = arith.constant 0 : index
    %c0_4 = arith.constant 0 : index
    %5 = vector.load %arg3[%c0_3, %c0_4] : memref<1x64xf32, #tpu.memory_space<vmem>>, vector<1x64xf32>
    %6 = vector.broadcast %5 : vector<1x64xf32> to vector<8x64xf32>
    %7 = arith.addf %4, %6 : vector<8x64xf32>
    %cst_5 = arith.constant 0.000000e+00 : f32
    %8 = vector.broadcast %cst_5 : f32 to vector<8x64xf32>
    %9 = arith.maximumf %7, %8 : vector<8x64xf32>
    %10 = math.absf %7 : vector<8x64xf32>
    %cst_6 = arith.constant 0.000000e+00 : f32
    %11 = vector.broadcast %cst_6 : f32 to vector<8x64xf32>
    %12 = arith.subf %11, %10 : vector<8x64xf32>
    %13 = math.exp %12 : vector<8x64xf32>
    %14 = math.log1p %13 : vector<8x64xf32>
    %15 = arith.addf %9, %14 : vector<8x64xf32>
    %16 = arith.truncf %15 : vector<8x64xf32> to vector<8x64xbf16>
    %c0_7 = arith.constant 0 : index
    %c0_8 = arith.constant 0 : index
    %17 = vector.load %arg4[%c0_7, %c0_8] : memref<64x16xf32, #tpu.memory_space<vmem>>, vector<64x16xf32>
    %18 = arith.truncf %17 : vector<64x16xf32> to vector<64x16xbf16>
    %cst_9 = arith.constant dense<0.000000e+00> : vector<8x16xf32>
    %19 = tpu.matmul %16, %18, %cst_9 {dimension_numbers = #tpu.dot_dimension_numbers<[1], [0], [0], [1], [0, 0, 1, 1], [], []>} : vector<8x64xbf16>, vector<64x16xbf16>, vector<8x16xf32> -> vector<8x16xf32>
    %c0_10 = arith.constant 0 : index
    %c0_11 = arith.constant 0 : index
    %20 = vector.load %arg5[%c0_10, %c0_11] : memref<1x16xf32, #tpu.memory_space<vmem>>, vector<1x16xf32>
    %21 = vector.broadcast %20 : vector<1x16xf32> to vector<8x16xf32>
    %22 = arith.addf %19, %21 : vector<8x16xf32>
    %c0_12 = arith.constant 0 : index
    %c0_13 = arith.constant 0 : index
    %23 = vector.load %arg6[%c0_12, %c0_13] : memref<8x16xf32, #tpu.memory_space<vmem>>, vector<8x16xf32>
    tpu.vector_store %arg6[%c0_12, %c0_13], %22 {strides = array<i32>} : memref<8x16xf32, #tpu.memory_space<vmem>>, vector<8x16xf32>,
    return
  }
  func.func @transform_0(%arg0: i32) -> (i32, i32) {
    %c0_i32 = arith.constant 0 : i32
    %c0_i32_0 = arith.constant 0 : i32
    return %arg0, %c0_i32 : i32, i32
  }
  func.func @transform_1(%arg0: i32) -> (i32, i32) {
    %c0_i32 = arith.constant 0 : i32
    %c0_i32_0 = arith.constant 0 : i32
    %c0_i32_1 = arith.constant 0 : i32
    return %c0_i32, %c0_i32_0 : i32, i32
  }
  func.func @transform_2(%arg0: i32) -> (i32, i32) {
    %c0_i32 = arith.constant 0 : i32
    %c0_i32_0 = arith.constant 0 : i32
    %c0_i32_1 = arith.constant 0 : i32
    return %c0_i32, %c0_i32_0 : i32, i32
  }
  func.func @transform_3(%arg0: i32) -> (i32, i32) {
    %c0_i32 = arith.constant 0 : i32
    %c0_i32_0 = arith.constant 0 : i32
    %c0_i32_1 = arith.constant 0 : i32
    return %c0_i32, %c0_i32_0 : i32, i32
  }
  func.func @transform_4(%arg0: i32) -> (i32, i32) {
    %c0_i32 = arith.constant 0 : i32
    %c0_i32_0 = arith.constant 0 : i32
    %c0_i32_1 = arith.constant 0 : i32
    return %c0_i32, %c0_i32_0 : i32, i32
  }
  func.func @transform_5(%arg0: i32) -> (i32, i32) {
    %c0_i32 = arith.constant 0 : i32
    %c0_i32_0 = arith.constant 0 : i32
    return %arg0, %c0_i32 : i32, i32
  }
}

</mosaic_0001>

<bundles_post_ra>
// kernel: tpu_custom_call.1
= control target key start
LH: loop header
LB: loop body
LE: loop exit
PB: predicated region body
PF: predicated region fallthrough
CT: control target
= control target key end

     0   :  { %v237_v3 = vmov 0.0   ;;  %vm238_vm0 = vmmov 0   ;;  %s318_s0 = inlined_call_operand.vmem [shape: f32[8,32], index: 0, kind: input, shape index: {}]   ;;  %s319_s1 = inlined_call_operand.vmem [shape: f32[32,64], index: 1, kind: input, shape index: {}]   ;;  %s320_s2 = inlined_call_operand.vmem [shape: f32[1,64], index: 2, kind: input, shape index: {}]   ;;  %s321_s3 = inlined_call_operand.vmem [shape: f32[64,16], index: 3, kind: input, shape index: {}]   ;;  %s322_s4 = inlined_call_operand.vmem [shape: f32[1,16], index: 4, kind: input, shape index: {}]   ;;  %s323_s5 = inlined_call_operand.hbm [shape: f32[8,16], index: 5, kind: output, shape index: {}]  }
   0x1   :  { %v26_v0 = vld [vmem:[%s319_s1 + $0x10] sm:$0xff]  ;;  %v27_v1 = vld [vmem:[%s319_s1 + $0x18] sm:$0xff]  ;;  %v24_v2 = vld [vmem:[%s319_s1] sm:$0xff]  ;;  %188 = vmatprep.subr.bf16.mxu0 %v237_v3  ;;  %192 = vmatprep.mubr.msk.bf16.mxu0 %vm238_vm0, %v237_v3 }
   0x2   :  { %v29_v4 = vpack.c.bf16 %v27_v1, %v26_v0  ;;  %v25_v5 = vld [vmem:[%s319_s1 + $0x8] sm:$0xff]  ;;  %196 = vmatprep.subr.bf16.mxu1 %v237_v3  ;;  %204 = vmatprep.mubr.msk.bf16.mxu1 %vm238_vm0, %v237_v3 }
   0x3   :  { %10 = vsyncpa [#allocation3], 0  ;;  %v28_v6 = vpack.c.bf16 %v25_v5, %v24_v2  ;;  %v22_v7 = vld [vmem:[%s318_s0] sm:$0xff]  ;;  %vm37_vm1 = vcmask 261120   ;;  %v103_v9 = vld [vmem:[%s321_s3 + $0x30] sm:$0xff]  ;;  %vm116_vm3 = vcmask 523264  }
   0x4   :  { %189 = vmatpush3.bf16.msra.mxu0 %v29_v4  ;;  %v23_v8 = vpack.c.bf16 %v22_v7, %v22_v7  ;;  %v104_v10 = vld [vmem:[%s321_s3 + $0x38] sm:$0xff]  ;;  %v101_v12 = vld [vmem:[%s321_s3 + $0x20] sm:$0xff]  ;;  %v102_v13 = vld [vmem:[%s321_s3 + $0x28] sm:$0xff]  ;;  %s239_s19 = smov [#allocation2]   ;;  %vm160_vm4 = vcmask 130048  }
   0x5   :  { %190 = vmatprep.subr.bf16.mxu0 %v237_v3  ;;  %v108_v11 = vpack.c.bf16 %v104_v10, %v103_v9  ;;  %v107_v14 = vpack.c.bf16 %v102_v13, %v101_v12  ;;  %v99_v15 = vld [vmem:[%s321_s3 + $0x10] sm:$0xff]  ;;  %v100_v16 = vld [vmem:[%s321_s3 + $0x18] sm:$0xff]  ;;  %v97_v18 = vld [vmem:[%s321_s3] sm:$0xff]  ;;  %s168_s20 = sshll.u32 %s239_s19, 4  ;;  %s169_s20 = int_to_ptr.vmem [resolvable:$true] %s168_s20 }
   0x6   :  { %v106_v17 = vpack.c.bf16 %v100_v16, %v99_v15  ;;  %v98_v19 = vld [vmem:[%s321_s3 + $0x8] sm:$0xff]  ;;  %v176_v21 = vld [vmem:[%s320_s2] ss:$0 sm:$0xff]  ;;  %s215_s21 = scalar_lea.vmem %s169_s20, 128  ;;  %p220_p1 = scmp.lt.s32.totalorder %s169_s20, %s169_s20 }
   0x7   :  { %197 = vmatpush3.bf16.msra.mxu1 %v108_v11  ;;  %v105_v20 = vpack.c.bf16 %v98_v19, %v97_v18  ;;  %v178_v42 = vld [vmem:[%s322_s4] ss:$0 sm:$0xff]  ;;  %p216_p0 = scmp.ne.s32.totalorder %s169_s20, %s215_s21  ;;  %p221_p2 = scmp.lt.s32.totalorder %s215_s21, %s215_s21 }
   0x8   :  { %191 = vmatpush3.bf16.msra.mxu0 %v28_v6  ;;  %198 = vmatprep.subr.bf16.mxu1 %v237_v3 }
   0x9   :  { %p222_p3 = por %p221_p2, %p220_p1 }
   0xb   :  { %193 = vmatmul.mubr.msk.bf16.vlgmr.msra.gmra.mxu0 %vm37_vm1, %v23_v8  ;;  %199 = vmatpush3.bf16.msra.mxu1 %v107_v14  ;;  %p223_p4 = pnand %p222_p3, %p216_p0 }
   0xc   :  { %200 = vmatprep.subr.bf16.mxu1 %v237_v3 }
   0xf   :  { %201 = vmatpush3.bf16.msra.mxu1 %v106_v17 }
  0x10   :  { %202 = vmatprep.subr.bf16.mxu1 %v237_v3 }
  0x13   :  { %203 = vmatpush3.bf16.msra.mxu1 %v105_v20 }
  0xcb   :  { %v75_v22 = vpop.f32.mrf.mxu0 }
  0xcc   :  { %v76_v23 = vadd.f32 %v176_v21, %v75_v22 }
  0xcd   :  { %v194_v24 = vpop.f32.mrf.mxu0 }
  0xce   :  { %v82_v25 = vand.u32 2147483647, %v76_v23  ;;  %v81_v38 = vmax.f32 %v76_v23, 0.0 }
  0xcf   :  { %v78_v26 = vpop.f32.mrf.mxu0 }
  0xd0   :  { %v83_v27 = vsub.f32 0.0, %v82_v25 }
  0xd1   :  { %v195_v28 = vpop.f32.mrf.mxu0 }
  0xd2   :  { %v84_v29 = vmul.f32 1.442695, %v83_v27 }
  0xd4   :  { %211 = vpow2.f32 %v84_v29 }
  0xe1   :  { %v212_v30 = vpop.eup %211 }
  0xe2   :  { %v86_v31 = vadd.f32 1.0, %v212_v30  ;;  %v89_v32 = vmul.f32 -0.5, %v212_v30  ;;  %v92_v34 = vand.u32 2147483647, %v212_v30 }
  0xe4   :  { %213 = vlog2.f32 %v86_v31  ;;  %v90_v33 = vadd.f32 1.0, %v89_v32  ;;  %vm93_vm2 = vcmp.lt.f32.partialorder %v92_v34, 0.0004427343 }
  0xe6   :  { %v91_v37 = vmul.f32 %v212_v30, %v90_v33 }
  0xf1   :  { %v214_v35 = vpop.eup %213 }
  0xf2   :  { %v88_v36 = vmul.f32 0.6931472, %v214_v35 }
  0xf4   :  { %v94_v39 = vsel %vm93_vm2, %v91_v37, %v88_v36 }
  0xf5   :  { %v95_v40 = vadd.f32 %v94_v39, %v81_v38 }
  0xf7   :  { %v96_v41 = vpack.c.bf16 %v95_v40, %v95_v40 }
  0xf9   :  { %205 = vmatmul.mubr.msk.bf16.vlgmr.msra.gmra.mxu1 %vm116_vm3, %v96_v41 }
 0x1b9   :  { %v154_v43 = vpop.f32.mrf.mxu1 }
 0x1ba   :  { %v155_v44 = vadd.f32 %v178_v42, %v154_v43 }
 0x1bb   :  { %v206_v45 = vpop.f32.mrf.mxu1 }
 0x1bc   :  { %161 = vst.msk [vmem:[#allocation2] sm:$0xff] %vm160_vm4, %v155_v44 }
 0x1bd   :  { %v157_v46 = vpop.f32.mrf.mxu1 }
 0x1be   :  { %226 = shalt.err (!%p223_p4)
}
 0x1bf   :  { %171 = dma.vmem_to_hbm [thread:$0]  %s169_s20, 128, %s323_s5, [#allocation3]   ;;  %v207_v47 = vpop.f32.mrf.mxu1 }
 0x1c0   :  { %235 = dma.done.wait [#allocation3], 128  }
 0x1c1   :  { %236 = vsyncadd [#allocation3], 4294967168 }
 0x1c2   :  { %175 = vsyncpa [#allocation3], 1 }

</bundles_post_ra>
